<compile_context>
chip_gen: v7x
topology: tpu7x:2x2x1
jax: 0.10.0
libtpu: 0.0.40
codegen_flags: <defaults>
</compile_context>

<pallas_src>
import functools
import math

import jax
import jax.numpy as jnp
from jax.experimental import pallas as pl
from jax.experimental.pallas import tpu as pltpu

LANE = 128                          # vreg lane width (last dim)
SUBLANE = 8                         # f32/uint32 sublane tile
_ALIGN_BYTES = LANE * SUBLANE * 4   # 4096 B: one (8,128) 32-bit tile
_MAX_OUTSTANDING_DMAS = 8           # outstanding HBM->HBM copies
_MIN_CHUNK_BYTES = 1 << 20          # aim for >= 1 MiB per DMA chunk


def _resolve_shape(total, shape):
    """PyTorch-style shape resolution, including a single -1 entry."""
    shape = tuple(int(s) for s in shape)
    if shape.count(-1) > 1:
        raise ValueError("only one dimension can be inferred")
    if -1 in shape:
        known = 1
        for s in shape:
            if s != -1:
                known *= s
        if known == 0 or total % known != 0:
            raise ValueError(f"cannot reshape {total} elements into shape {shape}")
        shape = tuple(total // known if s == -1 else s for s in shape)
    if math.prod(shape) != total:
        raise ValueError(f"cannot reshape {total} elements into shape {shape}")
    return shape


def _dma_copy_kernel(chunks, x_hbm, o_hbm, sem):
    """Chunked HBM->HBM DMA copy: start all copies, then wait on all of them."""
    copies = []
    for i, (start, size) in enumerate(chunks):
        cp = pltpu.make_async_copy(
            x_hbm.at[pl.ds(start, size), :],
            o_hbm.at[pl.ds(start, size), :],
            sem.at[i],
        )
        cp.start()
        copies.append(cp)
    for cp in copies:
        cp.wait()


def _materialized_copy(x2d, chunks):
    """Pallas call that copies the (rows, 128) 32-bit view HBM->HBM."""
    rows, lane = x2d.shape
    total_bytes = rows * lane * jnp.dtype(x2d.dtype).itemsize
    return pl.pallas_call(
        functools.partial(_dma_copy_kernel, chunks),
        out_shape=jax.ShapeDtypeStruct((rows, lane), x2d.dtype),
        in_specs=[pl.BlockSpec(memory_space=pl.ANY)],
        out_specs=pl.BlockSpec(memory_space=pl.ANY),
        scratch_shapes=[pltpu.SemaphoreType.DMA((len(chunks),))],
        cost_estimate=pl.CostEstimate(
            flops=0, transcendentals=0, bytes_accessed=2 * total_bytes),
    )(x2d)


def pallas_reshape(x, shape, *, materialize=False):
    """Equivalent of Reshape(shape).forward(x).

    materialize=False (default): metadata-only reshape, zero HBM traffic —
        identical semantics since JAX arrays are immutable and always
        logically contiguous.
    materialize=True: faithful `.contiguous()` — a fresh buffer is produced
        by a Pallas chunked HBM->HBM DMA copy.
    """
    total = x.size
    out_shape = _resolve_shape(total, shape)
    itemsize = jnp.dtype(x.dtype).itemsize
    total_bytes = total * itemsize

    # Fast path: no copy requested, empty tensor, exotic dtype, or flat length
    # not aligned to a full (8,128) 32-bit tile -> pure metadata reshape.
    if (not materialize
            or total == 0
            or x.dtype == jnp.bool_
            or itemsize not in (1, 2, 4)
            or total_bytes % _ALIGN_BYTES != 0):
        return x.reshape(out_shape)

    # Normalize sub-32-bit dtypes to a uint32 view (pure bitcast, no HBM pass)
    # so the DMA always runs over f32-style (8,128)-aligned rows.
    if itemsize == 4:
        flat = x.reshape(-1)
        cast_back = None
    else:
        ratio = 4 // itemsize
        flat = jax.lax.bitcast_convert_type(x.reshape(-1, ratio), jnp.uint32)
        cast_back = x.dtype

    words = flat.size               # 32-bit words
    rows = words // LANE            # total_bytes % 4096 == 0  =>  rows % 8 == 0
    x2d = flat.reshape(rows, LANE)

    # Chunk into a few large outstanding DMAs (>= 1 MiB each when possible),
    # with 8-row (one sublane tile) aligned starts and balanced sizes.
    units = rows // SUBLANE
    want = max(1, min(_MAX_OUTSTANDING_DMAS, total_bytes // _MIN_CHUNK_BYTES))
    n_chunks = max(1, min(want, units))
    base, rem = divmod(units, n_chunks)
    chunks, start = [], 0
    for i in range(n_chunks):
        size = (base + (1 if i < rem else 0)) * SUBLANE
        chunks.append((start, size))
        start += size
    assert start == rows

    y2d = _materialized_copy(x2d, tuple(chunks))

    y = y2d.reshape(-1)
    if cast_back is not None:
        y = jax.lax.bitcast_convert_type(y, cast_back).reshape(-1)
    return y.reshape(out_shape)


if __name__ == "__main__":
    key = jax.random.PRNGKey(0)
    # NCHW input, as a PyTorch conv feature map would be.
    x = jax.random.normal(key, (2, 4, 16, 16), dtype=jnp.float32)

    # Reshape(shape=(2, -1)) with a materialized copy -> runs the Pallas kernel.
    y = pallas_reshape(x, (2, -1), materialize=True)
    y = jax.block_until_ready(y)
    ref = x.reshape(2, -1)
    assert y.shape == (2, 4 * 16 * 16), y.shape
    assert y.dtype == x.dtype
    assert bool(jnp.array_equal(y, ref))

    # bf16 input exercises the uint32-bitcast normalization path.
    xb = x.astype(jnp.bfloat16)
    yb = jax.block_until_ready(pallas_reshape(xb, (2, 4, -1), materialize=True))
    assert yb.shape == (2, 4, 256) and yb.dtype == jnp.bfloat16
    assert bool(jnp.array_equal(yb, xb.reshape(2, 4, -1)))

    # Default (reviewer-preferred) path: metadata-only reshape, no HBM traffic.
    yf = jax.block_until_ready(pallas_reshape(x, (8, 8, 32)))
    assert bool(jnp.array_equal(yf, x.reshape(8, 8, 32)))

    print("KERNEL_OK")
</pallas_src>

<mosaic_0001>
module attributes {stable_mosaic.version = 11 : i64} {
  func.func @_dma_copy_kernel(%arg0: memref<16x128xf32, #tpu.memory_space<any>>, %arg1: memref<16x128xf32, #tpu.memory_space<any>>, %arg2: memref<1x!tpu.dma_semaphore, #tpu.memory_space<semaphore_mem>>) attributes {dimension_semantics = [], scalar_prefetch = 0 : i64, scratch_operands = 1 : i64, tpu.core_type = #tpu.core_type<tc>} {
    %c0_i32 = arith.constant 0 : i32
    %c0_i32_0 = arith.constant 0 : i32
    %c0_i32_1 = arith.constant 0 : i32
    %0 = tpu.memref_slice %arg0[%c0_i32_0, %c0_i32_1] : memref<16x128xf32, #tpu.memory_space<any>> -> memref<16x128xf32, #tpu.memory_space<any>>
    %c0_i32_2 = arith.constant 0 : i32
    %c0_i32_3 = arith.constant 0 : i32
    %1 = tpu.memref_slice %arg1[%c0_i32_2, %c0_i32_3] : memref<16x128xf32, #tpu.memory_space<any>> -> memref<16x128xf32, #tpu.memory_space<any>>
    %2 = tpu.memref_slice %arg2[%c0_i32] : memref<1x!tpu.dma_semaphore, #tpu.memory_space<semaphore_mem>> -> memref<1x!tpu.dma_semaphore, #tpu.memory_space<semaphore_mem>>
    %3 = tpu.memref_squeeze %2 : memref<1x!tpu.dma_semaphore, #tpu.memory_space<semaphore_mem>> -> memref<!tpu.dma_semaphore, #tpu.memory_space<semaphore_mem>>
    tpu.enqueue_dma source(%0 : memref<16x128xf32, #tpu.memory_space<any>>) target(%1 : memref<16x128xf32, #tpu.memory_space<any>>) target_semaphore(%3 : memref<!tpu.dma_semaphore, #tpu.memory_space<semaphore_mem>>)
    %c0_i32_4 = arith.constant 0 : i32
    %c0_i32_5 = arith.constant 0 : i32
    %c0_i32_6 = arith.constant 0 : i32
    %4 = tpu.memref_slice %arg0[%c0_i32_5, %c0_i32_6] : memref<16x128xf32, #tpu.memory_space<any>> -> memref<16x128xf32, #tpu.memory_space<any>>
    %c0_i32_7 = arith.constant 0 : i32
    %c0_i32_8 = arith.constant 0 : i32
    %5 = tpu.memref_slice %arg1[%c0_i32_7, %c0_i32_8] : memref<16x128xf32, #tpu.memory_space<any>> -> memref<16x128xf32, #tpu.memory_space<any>>
    %6 = tpu.memref_slice %arg2[%c0_i32_4] : memref<1x!tpu.dma_semaphore, #tpu.memory_space<semaphore_mem>> -> memref<1x!tpu.dma_semaphore, #tpu.memory_space<semaphore_mem>>
    %7 = tpu.memref_squeeze %6 : memref<1x!tpu.dma_semaphore, #tpu.memory_space<semaphore_mem>> -> memref<!tpu.dma_semaphore, #tpu.memory_space<semaphore_mem>>
    tpu.wait_dma2 semaphore(%7 : memref<!tpu.dma_semaphore, #tpu.memory_space<semaphore_mem>>) src(%4 : memref<16x128xf32, #tpu.memory_space<any>>) dst(%5 : memref<16x128xf32, #tpu.memory_space<any>>)
    return
  }
}

</mosaic_0001>

<bundles_post_ra>
// kernel: tpu_custom_call.1
= control target key start
LH: loop header
LB: loop body
LE: loop exit
PB: predicated region body
PF: predicated region fallthrough
CT: control target
= control target key end

     0   :  { %s34_s6 = smov [#allocation2]   ;;  %s35_s7 = smov [#allocation3]   ;;  %s53_s0 = inlined_call_operand.hbm [shape: f32[16,128], index: 0, kind: input, shape index: {}]   ;;  %s54_s1 = inlined_call_operand.hbm [shape: f32[16,128], index: 1, kind: output, shape index: {}]  }
   0x1   :  { %s36_s8 = smov 0  }
   0x2   :  { %18 = dma.general %s53_s0, 256, %s54_s1, %s34_s6, %s35_s7, [#allocation4], %s36_s8, 0  }
   0x3   :  { %32 = dma.done.wait [#allocation2], 256 }
   0x4   :  { %33 = vsyncadd [#allocation2], 4294967040 }
   0x5   :  { %22 = vsyncmov [#allocation2] }
   0x8   :  { %s23_s13 = vpop.sfrf %22 }
   0x9   :  { %p28_p0 = scmp.ne.s32.totalorder %s23_s13, 0 }
   0xb   :  { %27 = shalt.err (%p28_p0)  }

</bundles_post_ra>
